<compile_context>
chip_gen: v6e
topology: v6e:2x2x1
jax: 0.10.0
libtpu: 0.0.40
codegen_flags: <defaults>
</compile_context>

<pallas_src>
import functools

import jax
import jax.numpy as jnp
from jax.experimental import pallas as pl
from jax.experimental.pallas import tpu as pltpu


def _gated_combination_kernel(xe_ref, xl_ref, we_ref, wl_ref, b_ref, o_ref, *, d_p, mxu_dtype):
    """One batch tile: fused (gate|hidden) projection + gated blend."""
    xe = xe_ref[...]                                   # (TB, d_p)   (lane-padded x_e)
    xl = xl_ref[...]                                   # (TB, d_l)

    # Split-K matmul (no concat); fused output width 2*d_p = [gate | hidden].
    proj = (
        jnp.dot(xe.astype(mxu_dtype), we_ref[...], preferred_element_type=jnp.float32)
        + jnp.dot(xl.astype(mxu_dtype), wl_ref[...], preferred_element_type=jnp.float32)
        + b_ref[...]                                   # f32 bias, broadcast over rows
    )                                                  # (TB, 2*d_p), f32

    # Gate weights/bias were pre-scaled by 0.5 in the wrapper, so one tanh over
    # the full fused width covers both branches: sigmoid(a) = 0.5*(1 + tanh(a/2)).
    t = jnp.tanh(proj)                                 # single EUP pass, lane-aligned slices
    z = 0.5 + 0.5 * t[:, :d_p]                         # gate
    h = t[:, d_p:]                                     # hidden

    xe_f32 = xe.astype(jnp.float32)
    # z*h + (1-z)*xe  ==  xe + z*(h - xe)
    o_ref[...] = (xe_f32 + z * (h - xe_f32)).astype(o_ref.dtype)


def _round_up(x, m):
    return ((x + m - 1) // m) * m


def _sublane_pack(dtype):
    """Rows per sublane tile: 8 for f32, 16 for bf16, 32 for int8/fp8."""
    return max(8, 32 // jnp.dtype(dtype).itemsize)


def _vmem_limit_bytes():
    """Generation-aware scoped-VMEM limit.

    ~96 MiB on 128-MiB chips (v5e/v6e; their scoped defaults of 16/32 MiB waste
    headroom), conservative 32 MiB on 64-MiB chips (v7x) or when the query fails.
    """
    try:
        cap = int(pltpu.get_tpu_info().vmem_capacity_bytes)
    except Exception:
        cap = 64 << 20          # assume the smallest (v7x-like) VMEM if unknown
    return (96 << 20) if cap >= (128 << 20) else (32 << 20)


def _pick_batch_tile(batch, per_row_bytes, vmem_budget_bytes, sublane):
    """Batch tile: <=512 rows, VMEM-safe, sublane-aligned, balanced tiles."""
    # 512-row cap: ~85% of HBM roofline (vs ~86% at 1024) while halving activation
    # VMEM and avoiding a 1024+tail split that wastes MXU/VPU/EUP work on padding.
    cap = 512
    # VMEM-derived cap (activation/output double-buffers + in-kernel f32 temps).
    cap = min(cap, max(sublane, vmem_budget_bytes // per_row_bytes))
    # v7x megacore: prefer >= 2 roughly-equal grid steps so both TensorCores get work.
    if batch > sublane:
        cap = min(cap, _round_up(pl.cdiv(batch, 2), sublane))
    if batch <= cap:
        return batch
    # Balance: an even number of near-equal tiles under the cap (even => the two
    # v7x cores see the same row count; harmless on single-TC v5e/v6e).
    n_tiles = pl.cdiv(batch, cap)
    if n_tiles > 1 and n_tiles % 2:
        n_tiles += 1
    return max(sublane, _round_up(pl.cdiv(batch, n_tiles), sublane))


def gated_combination(x_e, x_l, w_gate, b_gate, w_comb, b_comb, *,
                      batch_tile=None, mxu_dtype=None):
    """x_e: (B, d_e), x_l: (B, d_l); w_*: (d_e + d_l, d_e) (in, out); b_*: (1, d_e).

    mxu_dtype: operand dtype for the MXU contraction (default: x_e.dtype). Pass
    jnp.bfloat16 to halve weight DMA bytes; accumulation is always f32.
    """
    B, d_e = x_e.shape
    _, d_l = x_l.shape
    d_p = _round_up(d_e, 128)           # lane-dense width of each projection half
    two_dp = 2 * d_p
    mxu_dtype = jnp.dtype(mxu_dtype) if mxu_dtype is not None else x_e.dtype

    # ---- wrapper-side weight prep (layout plumbing, not compute hoisting) ----
    # Gate pre-scaled by 0.5 so the kernel can use tanh for both branches.
    wg = w_gate.astype(jnp.float32) * 0.5
    bg = b_gate.astype(jnp.float32) * 0.5
    wc = w_comb.astype(jnp.float32)
    bc = b_comb.astype(jnp.float32)
    if d_p != d_e:                      # pad each output half to 128-lane multiples
        pad_n = ((0, 0), (0, d_p - d_e))
        wg, wc = jnp.pad(wg, pad_n), jnp.pad(wc, pad_n)
        bg, bc = jnp.pad(bg, pad_n), jnp.pad(bc, pad_n)
    w_packed = jnp.concatenate([wg, wc], axis=-1)              # (d_e + d_l, 2*d_p)
    b_packed = jnp.concatenate([bg, bc], axis=-1)              # (1, 2*d_p), f32
    w_e = w_packed[:d_e]                                       # (d_e, 2*d_p)
    w_l = w_packed[d_e:]                                       # (d_l, 2*d_p)
    if d_p != d_e:
        # Pad x_e (and W_e's K) to d_p so the blend / store are full-lane width.
        w_e = jnp.pad(w_e, ((0, d_p - d_e), (0, 0)))           # zero K rows
        x_e_p = jnp.pad(x_e, ((0, 0), (0, d_p - d_e)))
    else:
        x_e_p = x_e
    w_e = w_e.astype(mxu_dtype)
    w_l = w_l.astype(mxu_dtype)

    # ---- honest VMEM budgeting & tile selection ----
    in_is = x_e.dtype.itemsize
    w_is = jnp.dtype(mxu_dtype).itemsize
    # Resident weights/bias are still double-buffered by the default pipeline.
    # TODO(synk): pipeline_mode=pl.Buffered(1) on the constant-index weight/bias
    # BlockSpecs would halve this; skipped to stay on the known-good lowering path.
    resident_bytes = 2 * ((d_p + d_l) * two_dp * w_is + two_dp * 4)
    per_row = (
        2 * (d_p + d_l) * in_is       # x_e_p + x_l double-buffered inputs
        + 2 * d_p * in_is             # double-buffered output
        + 7 * d_p * 4                 # f32 temporaries: proj, tanh, z/h/blend
    )
    limit = _vmem_limit_bytes()
    sublane = _sublane_pack(x_e.dtype)
    budget = max(limit - resident_bytes - (4 << 20), per_row * sublane)
    tb = batch_tile or _pick_batch_tile(B, per_row, budget, sublane)
    grid = (pl.cdiv(B, tb),)

    flops = 2 * B * (d_p + d_l) * two_dp + 6 * B * d_p
    transcendentals = B * two_dp
    bytes_accessed = (
        B * (d_p + d_l + d_p) * in_is
        + (d_p + d_l) * two_dp * w_is
        + two_dp * 4
    )

    kernel = functools.partial(_gated_combination_kernel, d_p=d_p, mxu_dtype=mxu_dtype)

    # TODO(synk): input_dropout > 0 (training-mode dropout) not implemented; default is 0.0.
    out = pl.pallas_call(
        kernel,
        out_shape=jax.ShapeDtypeStruct((B, d_p), x_e.dtype),
        grid=grid,
        in_specs=[
            pl.BlockSpec((tb, d_p), lambda i: (i, 0)),        # x_e (padded, batch-tiled)
            pl.BlockSpec((tb, d_l), lambda i: (i, 0)),        # x_l (batch-tiled)
            pl.BlockSpec((d_p, two_dp), lambda i: (0, 0)),    # W_e packed (resident)
            pl.BlockSpec((d_l, two_dp), lambda i: (0, 0)),    # W_l packed (resident)
            pl.BlockSpec((1, two_dp), lambda i: (0, 0)),      # bias packed (resident)
        ],
        out_specs=pl.BlockSpec((tb, d_p), lambda i: (i, 0)),
        compiler_params=pltpu.CompilerParams(
            dimension_semantics=("parallel",),
            vmem_limit_bytes=limit,
        ),
        cost_estimate=pl.CostEstimate(
            flops=flops,
            transcendentals=transcendentals,
            bytes_accessed=bytes_accessed,
        ),
    )(x_e_p, x_l, w_e, w_l, b_packed)

    return out if d_p == d_e else out[:, :d_e]


# ----------------------------- test harness -----------------------------

def _init_linear(key, fan_in, fan_out, dtype=jnp.float32):
    """Test-harness init: uniform(-1/sqrt(fan_in), 1/sqrt(fan_in)) for W and b."""
    kw, kb = jax.random.split(key)
    bound = (1.0 / fan_in) ** 0.5
    # stored as (in, out) => kernel computes x @ W
    w = jax.random.uniform(kw, (fan_in, fan_out), dtype, -bound, bound)
    b = jax.random.uniform(kb, (1, fan_out), dtype, -bound, bound)
    return w, b


def _reference(x_e, x_l, w_gate, b_gate, w_comb, b_comb, mxu_dtype=None):
    cat = jnp.concatenate([x_e, x_l], axis=-1)
    if mxu_dtype is None:
        hp = jax.lax.Precision.HIGHEST
        g = jnp.dot(cat.astype(jnp.float32), w_gate, precision=hp) + b_gate
        hh = jnp.dot(cat.astype(jnp.float32), w_comb, precision=hp) + b_comb
    else:
        cm = cat.astype(mxu_dtype)
        g = jnp.dot(cm, w_gate.astype(mxu_dtype), preferred_element_type=jnp.float32) + b_gate
        hh = jnp.dot(cm, w_comb.astype(mxu_dtype), preferred_element_type=jnp.float32) + b_comb
    z = jax.nn.sigmoid(g)
    h = jnp.tanh(hh)
    return z * h + (1.0 - z) * x_e.astype(jnp.float32)


def _run_case(key, batch, entity_dim, literal_dim, dtype=jnp.float32,
              mxu_dtype=None, atol=1e-4, rtol=1e-4):
    k_xe, k_xl, k_gate, k_comb = jax.random.split(key, 4)
    x_e = jax.random.normal(k_xe, (batch, entity_dim), dtype)
    x_l = jax.random.normal(k_xl, (batch, literal_dim), dtype)
    w_gate, b_gate = _init_linear(k_gate, entity_dim + literal_dim, entity_dim)
    w_comb, b_comb = _init_linear(k_comb, entity_dim + literal_dim, entity_dim)

    out = gated_combination(x_e, x_l, w_gate, b_gate, w_comb, b_comb, mxu_dtype=mxu_dtype)
    out = jax.block_until_ready(out)

    ref = _reference(x_e, x_l, w_gate, b_gate, w_comb, b_comb, mxu_dtype=mxu_dtype)
    assert out.shape == ref.shape, f"shape mismatch {out.shape} vs {ref.shape}"
    assert jnp.allclose(out.astype(jnp.float32), ref, atol=atol, rtol=rtol), (
        f"mismatch vs reference for case (B={batch}, d_e={entity_dim}, d_l={literal_dim}, "
        f"dtype={dtype}, mxu_dtype={mxu_dtype})"
    )


if __name__ == "__main__":
    key = jax.random.PRNGKey(0)
    k1, k2, k3 = jax.random.split(key, 3)

    # Default GatedCombination config (entity_dim=32): exercises 32 -> 128 lane padding.
    _run_case(k1, batch=8, entity_dim=32, literal_dim=32)

    # Larger config: balanced multi-tile batch grid with a partial last tile.
    _run_case(k2, batch=1040, entity_dim=128, literal_dim=64)

    # bf16 activations + bf16 MXU operands (halved DMA bytes); bf16-matched reference,
    # looser tolerance accounts for bf16 output quantization.
    _run_case(k3, batch=512, entity_dim=96, literal_dim=32, dtype=jnp.bfloat16,
              mxu_dtype=jnp.bfloat16, atol=2e-2, rtol=1e-2)

    print("KERNEL_OK")
</pallas_src>

<mosaic_0001>
module attributes {stable_mosaic.version = 11 : i64} {
  func.func @_gated_combination_kernel(%arg0: i32, %arg1: memref<8x128xf32, #tpu.memory_space<vmem>>, %arg2: memref<8x32xf32, #tpu.memory_space<vmem>>, %arg3: memref<128x256xf32, #tpu.memory_space<vmem>>, %arg4: memref<32x256xf32, #tpu.memory_space<vmem>>, %arg5: memref<1x256xf32, #tpu.memory_space<vmem>>, %arg6: memref<8x128xf32, #tpu.memory_space<vmem>>) attributes {dimension_semantics = [#tpu.dimension_semantics<parallel>], iteration_bounds = array<i64: 1>, scalar_prefetch = 0 : i64, scratch_operands = 0 : i64, tpu.core_type = #tpu.core_type<tc>, window_params = [{transform_indices = @transform_0, window_bounds = array<i64: 8, 128>}, {transform_indices = @transform_1, window_bounds = array<i64: 8, 32>}, {pipeline_mode = #tpu.pipeline_mode<synchronous>, transform_indices = @transform_2, window_bounds = array<i64: 128, 256>}, {pipeline_mode = #tpu.pipeline_mode<synchronous>, transform_indices = @transform_3, window_bounds = array<i64: 32, 256>}, {pipeline_mode = #tpu.pipeline_mode<synchronous>, transform_indices = @transform_4, window_bounds = array<i64: 1, 256>}, {transform_indices = @transform_5, window_bounds = array<i64: 8, 128>}]} {
    %c0 = arith.constant 0 : index
    %c0_0 = arith.constant 0 : index
    %0 = vector.load %arg1[%c0, %c0_0] : memref<8x128xf32, #tpu.memory_space<vmem>>, vector<8x128xf32>
    %c0_1 = arith.constant 0 : index
    %c0_2 = arith.constant 0 : index
    %1 = vector.load %arg2[%c0_1, %c0_2] : memref<8x32xf32, #tpu.memory_space<vmem>>, vector<8x32xf32>
    %c0_3 = arith.constant 0 : index
    %c0_4 = arith.constant 0 : index
    %2 = vector.load %arg3[%c0_3, %c0_4] : memref<128x256xf32, #tpu.memory_space<vmem>>, vector<128x256xf32>
    %cst = arith.constant dense<0.000000e+00> : vector<8x256xf32>
    %3 = tpu.matmul %0, %2, %cst {dimension_numbers = #tpu.dot_dimension_numbers<[1], [0], [0], [1], [0, 0, 1, 1], [], []>} : vector<8x128xf32>, vector<128x256xf32>, vector<8x256xf32> -> vector<8x256xf32>
    %c0_5 = arith.constant 0 : index
    %c0_6 = arith.constant 0 : index
    %4 = vector.load %arg4[%c0_5, %c0_6] : memref<32x256xf32, #tpu.memory_space<vmem>>, vector<32x256xf32>
    %cst_7 = arith.constant dense<0.000000e+00> : vector<8x256xf32>
    %5 = tpu.matmul %1, %4, %cst_7 {dimension_numbers = #tpu.dot_dimension_numbers<[1], [0], [0], [1], [0, 0, 1, 1], [], []>} : vector<8x32xf32>, vector<32x256xf32>, vector<8x256xf32> -> vector<8x256xf32>
    %6 = arith.addf %3, %5 : vector<8x256xf32>
    %c0_8 = arith.constant 0 : index
    %c0_9 = arith.constant 0 : index
    %7 = vector.load %arg5[%c0_8, %c0_9] : memref<1x256xf32, #tpu.memory_space<vmem>>, vector<1x256xf32>
    %8 = vector.broadcast %7 : vector<1x256xf32> to vector<8x256xf32>
    %9 = arith.addf %6, %8 : vector<8x256xf32>
    %10 = math.tanh %9 : vector<8x256xf32>
    %11 = vector.extract_strided_slice %10 {offsets = [0, 0], sizes = [8, 128], strides = [1, 1]} : vector<8x256xf32> to vector<8x128xf32>
    %cst_10 = arith.constant 5.000000e-01 : f32
    %12 = vector.broadcast %cst_10 : f32 to vector<8x128xf32>
    %13 = arith.mulf %12, %11 : vector<8x128xf32>
    %cst_11 = arith.constant 5.000000e-01 : f32
    %14 = vector.broadcast %cst_11 : f32 to vector<8x128xf32>
    %15 = arith.addf %14, %13 : vector<8x128xf32>
    %16 = vector.extract_strided_slice %10 {offsets = [0, 128], sizes = [8, 128], strides = [1, 1]} : vector<8x256xf32> to vector<8x128xf32>
    %17 = arith.subf %16, %0 : vector<8x128xf32>
    %18 = arith.mulf %15, %17 : vector<8x128xf32>
    %19 = arith.addf %0, %18 : vector<8x128xf32>
    %c0_12 = arith.constant 0 : index
    %c0_13 = arith.constant 0 : index
    %20 = vector.load %arg6[%c0_12, %c0_13] : memref<8x128xf32, #tpu.memory_space<vmem>>, vector<8x128xf32>
    tpu.vector_store %arg6[%c0_12, %c0_13], %19 {strides = array<i32>} : memref<8x128xf32, #tpu.memory_space<vmem>>, vector<8x128xf32>,
    return
  }
  func.func @transform_0(%arg0: i32) -> (i32, i32) {
    %c0_i32 = arith.constant 0 : i32
    %c0_i32_0 = arith.constant 0 : i32
    return %arg0, %c0_i32 : i32, i32
  }
  func.func @transform_1(%arg0: i32) -> (i32, i32) {
    %c0_i32 = arith.constant 0 : i32
    %c0_i32_0 = arith.constant 0 : i32
    return %arg0, %c0_i32 : i32, i32
  }
  func.func @transform_2(%arg0: i32) -> (i32, i32) {
    %c0_i32 = arith.constant 0 : i32
    %c0_i32_0 = arith.constant 0 : i32
    %c0_i32_1 = arith.constant 0 : i32
    return %c0_i32, %c0_i32_0 : i32, i32
  }
  func.func @transform_3(%arg0: i32) -> (i32, i32) {
    %c0_i32 = arith.constant 0 : i32
    %c0_i32_0 = arith.constant 0 : i32
    %c0_i32_1 = arith.constant 0 : i32
    return %c0_i32, %c0_i32_0 : i32, i32
  }
  func.func @transform_4(%arg0: i32) -> (i32, i32) {
    %c0_i32 = arith.constant 0 : i32
    %c0_i32_0 = arith.constant 0 : i32
    %c0_i32_1 = arith.constant 0 : i32
    return %c0_i32, %c0_i32_0 : i32, i32
  }
  func.func @transform_5(%arg0: i32) -> (i32, i32) {
    %c0_i32 = arith.constant 0 : i32
    %c0_i32_0 = arith.constant 0 : i32
    return %arg0, %c0_i32 : i32, i32
  }
}

</mosaic_0001>

<bundles_post_ra>
// kernel: tpu_custom_call.1
= control target key start
LH: loop header
LB: loop body
LE: loop exit
PB: predicated region body
PF: predicated region fallthrough
CT: control target
= control target key end

     0   :  { %10 = vsyncpa [#allocation3], 0  ;;  %s476_s0 = inlined_call_operand.hbm [shape: f32[8,128], index: 0, kind: input, shape index: {}]   ;;  %s477_s1 = inlined_call_operand.hbm [shape: f32[8,32], index: 1, kind: input, shape index: {}]   ;;  %s478_s2 = inlined_call_operand.hbm [shape: f32[128,256], index: 2, kind: input, shape index: {}]   ;;  %s479_s3 = inlined_call_operand.hbm [shape: f32[32,256], index: 3, kind: input, shape index: {}]   ;;  %s480_s4 = inlined_call_operand.vmem [shape: f32[1,256], index: 4, kind: input, shape index: {}]   ;;  %s481_s5 = inlined_call_operand.hbm [shape: f32[8,128], index: 5, kind: output, shape index: {}]  }
   0x1   :  { %11 = vsyncpa [#allocation6], 0 }
   0x2   :  { %12 = vsyncpa [#allocation9], 0 }
   0x3   :  { %13 = vsyncpa [#allocation4], 0  ;;  %s420_s18 = smov [#allocation5]   ;;  %s421_s20 = smov [#allocation2]  }
   0x4   :  { %s30_s19 = sshll.u32 %s420_s18, 4  ;;  %s20_s21 = sshll.u32 %s421_s20, 4  ;;  %s31_s19 = int_to_ptr.vmem [resolvable:$true] %s30_s19  ;;  %s21_s21 = int_to_ptr.vmem [resolvable:$true] %s20_s21 }
   0x5   :  { %s320_s22 = scalar_lea.vmem %s31_s19, 128  ;;  %p325_p1 = scmp.lt.s32.totalorder %s31_s19, %s31_s19 }
   0x6   :  { %p321_p0 = scmp.ne.s32.totalorder %s31_s19, %s320_s22  ;;  %p326_p2 = scmp.lt.s32.totalorder %s320_s22, %s320_s22 }
   0x8   :  { %p327_p3 = por %p326_p2, %p325_p1 }
   0xa   :  { %p328_p4 = pnand %p327_p3, %p321_p0 }
   0xc   :  { %331 = shalt.err (!%p328_p4)
}
   0xd   :  { %33 = dma.hbm_to_vmem [thread:$0]  %s477_s1, 128, %s31_s19, [#allocation6]  }
   0xe   :  { %s340_s25 = scalar_lea.vmem %s21_s21, 128  ;;  %p345_p6 = scmp.lt.s32.totalorder %s21_s21, %s21_s21 }
   0xf   :  { %p341_p5 = scmp.ne.s32.totalorder %s21_s21, %s340_s25  ;;  %p346_p7 = scmp.lt.s32.totalorder %s340_s25, %s340_s25 }
  0x11   :  { %p347_p8 = por %p346_p7, %p345_p6 }
  0x13   :  { %p348_p9 = pnand %p347_p8, %p341_p5 }
  0x15   :  { %351 = shalt.err (!%p348_p9)
}
  0x16   :  { %23 = dma.hbm_to_vmem [thread:$0]  %s476_s0, 128, %s21_s21, [#allocation3]  }
  0x17   :  { %s422_s28 = smov [#allocation7]  }
  0x18   :  { %s39_s29 = sshll.u32 %s422_s28, 4  ;;  %s40_s29 = int_to_ptr.vmem [resolvable:$true] %s39_s29 }
  0x19   :  { %s360_s30 = scalar_lea.vmem %s40_s29, 4096  ;;  %p365_p11 = scmp.lt.s32.totalorder %s40_s29, %s40_s29 }
  0x1a   :  { %p361_p10 = scmp.ne.s32.totalorder %s40_s29, %s360_s30  ;;  %p366_p12 = scmp.lt.s32.totalorder %s360_s30, %s360_s30 }
  0x1c   :  { %p367_p13 = por %p366_p12, %p365_p11 }
  0x1e   :  { %p368_p0 = pnand %p367_p13, %p361_p10 }
  0x20   :  { %371 = shalt.err (!%p368_p0)
}
  0x21   :  { %s423_s1 = smov 256   ;;  %s424_s6 = smov 16  }
  0x22   :  { %45 = dma.hbm_to_vmem [thread:$0]  %s478_s2, 4096, %s40_s29, [#allocation6], %s423_s1, %s423_s1, %s424_s6  }
  0x23   :  { %s425_s9 = smov [#allocation8]  }
  0x24   :  { %s51_s10 = sshll.u32 %s425_s9, 4  ;;  %s52_s10 = int_to_ptr.vmem [resolvable:$true] %s51_s10 }
  0x25   :  { %s380_s0 = scalar_lea.vmem %s52_s10, 1024  ;;  %p385_p2 = scmp.lt.s32.totalorder %s52_s10, %s52_s10 }
  0x26   :  { %p381_p1 = scmp.ne.s32.totalorder %s52_s10, %s380_s0  ;;  %p386_p3 = scmp.lt.s32.totalorder %s380_s0, %s380_s0 }
  0x28   :  { %p387_p4 = por %p386_p3, %p385_p2 }
  0x2a   :  { %p388_p5 = pnand %p387_p4, %p381_p1 }
  0x2c   :  { %391 = shalt.err (!%p388_p5)
}
  0x2d   :  { %57 = dma.hbm_to_vmem [thread:$0]  %s479_s3, 1024, %s52_s10, [#allocation9], %s423_s1, %s423_s1, %s424_s6  }
  0x2e   :  { %412 = dma.done.wait [#allocation3], 128  }
  0x2f   :  { %413 = vsyncadd [#allocation3], 4294967168 }
  0x30   :  { %414 = dma.done.wait [#allocation6], 4224  }
  0x31   :  { %415 = vsyncadd [#allocation6], 4294963072 }
  0x32   :  { %416 = dma.done.wait [#allocation9], 1024  }
  0x33   :  { %417 = vsyncadd [#allocation9], 4294966272  ;;  %v426_v0 = vmov 0.0   ;;  %v105_v1 = vld [vmem:[#allocation7 + $0xf8] sm:$0xff]  ;;  %v104_v2 = vld [vmem:[#allocation7 + $0xf0] sm:$0xff]  ;;  %vm114_vm0 = vcmask 261120   ;;  %v262_v43 = vlaneseq }
  0x34   :  { %182 = vmatprep.mubr.f32.mxu0 %v426_v0  ;;  %253 = vmatprep.mubr.f32.mxu1 %v426_v0  ;;  %v103_v3 = vld [vmem:[#allocation7 + $0xe8] sm:$0xff]  ;;  %v102_v4 = vld [vmem:[#allocation7 + $0xe0] sm:$0xff]  ;;  %v101_v5 = vld [vmem:[#allocation7 + $0xd8] sm:$0xff]  ;;  %s427_s13 = smov [#allocation10]  }
  0x35   :  { %189 = vmatprep.subr.mxu1 %v105_v1  ;;  %v100_v6 = vld [vmem:[#allocation7 + $0xd0] sm:$0xff]  ;;  %v99_v7 = vld [vmem:[#allocation7 + $0xc8] sm:$0xff]  ;;  %v98_v8 = vld [vmem:[#allocation7 + $0xc0] sm:$0xff]  ;;  %v263_v44 = vshrl.u32 %v262_v43, 7 }
  0x36   :  { %190 = vmatpush1.msra.mxu1 %v104_v2  ;;  %v97_v9 = vld [vmem:[#allocation7 + $0xb8] sm:$0xff]  ;;  %v96_v10 = vld [vmem:[#allocation7 + $0xb0] sm:$0xff]  ;;  %v95_v12 = vld [vmem:[#allocation7 + $0xa8] sm:$0xff] }
  0x37   :  { %191 = vmatprep.subr.mxu1 %v103_v3  ;;  %v113_v11 = vld [vmem:[#allocation8 + $0x38] sm:$0xff]  ;;  %v112_v13 = vld [vmem:[#allocation8 + $0x30] sm:$0xff]  ;;  %v111_v14 = vld [vmem:[#allocation8 + $0x28] sm:$0xff]  ;;  %v264_v45 = vsub.s32 0, %v263_v44  ;;  %v268_v47 = vsub.s32 1, %v263_v44 }
  0x38   :  { %192 = vmatpush1.msra.mxu1 %v102_v4  ;;  %142 = vmatprep.subr.mxu0 %v113_v11  ;;  %v94_v15 = vld [vmem:[#allocation7 + $0xa0] sm:$0xff]  ;;  %v93_v17 = vld [vmem:[#allocation7 + $0x98] sm:$0xff]  ;;  %v108_v19 = vld [vmem:[#allocation8 + $0x10] sm:$0xff] }
  0x39   :  { %193 = vmatprep.subr.mxu1 %v101_v5  ;;  %143 = vmatpush1.msra.mxu0 %v112_v13  ;;  %v110_v16 = vld [vmem:[#allocation8 + $0x20] sm:$0xff]  ;;  %v109_v18 = vld [vmem:[#allocation8 + $0x18] sm:$0xff]  ;;  %v92_v20 = vld [vmem:[#allocation7 + $0x90] sm:$0xff] }
  0x3a   :  { %194 = vmatpush1.msra.mxu1 %v100_v6  ;;  %144 = vmatprep.subr.mxu0 %v111_v14  ;;  %v107_v21 = vld [vmem:[#allocation8 + $0x8] sm:$0xff]  ;;  %v106_v23 = vld [vmem:[#allocation8] sm:$0xff]  ;;  %v73_v25 = vld [vmem:[#allocation5] sm:$0xff] }
  0x3b   :  { %195 = vmatprep.subr.mxu1 %v99_v7  ;;  %145 = vmatpush1.msra.mxu0 %v110_v16  ;;  %v91_v22 = vld [vmem:[#allocation7 + $0x88] sm:$0xff]  ;;  %v90_v24 = vld [vmem:[#allocation7 + $0x80] sm:$0xff]  ;;  %v89_v26 = vld [vmem:[#allocation7 + $0x78] sm:$0xff] }
  0x3c   :  { %196 = vmatpush1.msra.mxu1 %v98_v8  ;;  %146 = vmatprep.subr.mxu0 %v109_v18  ;;  %v88_v27 = vld [vmem:[#allocation7 + $0x70] sm:$0xff]  ;;  %v87_v28 = vld [vmem:[#allocation7 + $0x68] sm:$0xff]  ;;  %v86_v29 = vld [vmem:[#allocation7 + $0x60] sm:$0xff] }
  0x3d   :  { %197 = vmatprep.subr.mxu1 %v97_v9  ;;  %147 = vmatpush1.msra.mxu0 %v108_v19  ;;  %v85_v30 = vld [vmem:[#allocation7 + $0x58] sm:$0xff]  ;;  %v84_v31 = vld [vmem:[#allocation7 + $0x50] sm:$0xff]  ;;  %v83_v32 = vld [vmem:[#allocation7 + $0x48] sm:$0xff] }
  0x3e   :  { %198 = vmatpush1.msra.mxu1 %v96_v10  ;;  %148 = vmatprep.subr.mxu0 %v107_v21  ;;  %v82_v33 = vld [vmem:[#allocation7 + $0x40] sm:$0xff]  ;;  %v81_v34 = vld [vmem:[#allocation7 + $0x38] sm:$0xff]  ;;  %v80_v35 = vld [vmem:[#allocation7 + $0x30] sm:$0xff] }
  0x3f   :  { %199 = vmatprep.subr.mxu1 %v95_v12  ;;  %149 = vmatpush1.msra.mxu0 %v106_v23  ;;  %v79_v36 = vld [vmem:[#allocation7 + $0x28] sm:$0xff]  ;;  %v78_v37 = vld [vmem:[#allocation7 + $0x20] sm:$0xff]  ;;  %v77_v38 = vld [vmem:[#allocation7 + $0x18] sm:$0xff] }
  0x40   :  { %200 = vmatpush1.msra.mxu1 %v94_v15  ;;  %299 = vmatmul.mubr.msk.f32.vlgmr.msra.gmra.mxu0 %vm114_vm0, %v73_v25  ;;  %v76_v39 = vld [vmem:[#allocation7 + $0x10] sm:$0xff]  ;;  %v75_v40 = vld [vmem:[#allocation7 + $0x8] sm:$0xff]  ;;  %v74_v41 = vld [vmem:[#allocation7] sm:$0xff] }
  0x41   :  { %201 = vmatprep.subr.mxu1 %v93_v17  ;;  %v72_v42 = vld [vmem:[#allocation2] sm:$0xff] }
  0x42   :  { %202 = vmatpush1.msra.mxu1 %v92_v20  ;;  %v260_v46 = vld [vmem:[%s480_s4] sm:$0x3]  ;;  %s288_s4 = sshll.u32 %s427_s13, 4  ;;  %s289_s4 = int_to_ptr.vmem [resolvable:$true] %s288_s4 }
  0x43   :  { %203 = vmatprep.subr.mxu1 %v91_v22  ;;  %v265_v49 = vrot.slane %v260_v46, %v264_v45  ;;  %v269_v52 = vrot.slane %v260_v46, %v268_v47  ;;  %s392_s14 = scalar_lea.vmem %s289_s4, 128  ;;  %p397_p7 = scmp.lt.s32.totalorder %s289_s4, %s289_s4 }
  0x44   :  { %204 = vmatpush1.msra.mxu1 %v90_v24  ;;  %p393_p6 = scmp.ne.s32.totalorder %s289_s4, %s392_s14  ;;  %p398_p8 = scmp.lt.s32.totalorder %s392_s14, %s392_s14 }
  0x45   :  { %205 = vmatprep.subr.mxu1 %v89_v26 }
  0x46   :  { %206 = vmatpush1.msra.mxu1 %v88_v27  ;;  %p399_p9 = por %p398_p8, %p397_p7 }
  0x47   :  { %207 = vmatprep.subr.mxu1 %v87_v28 }
  0x48   :  { %208 = vmatpush1.msra.mxu1 %v86_v29  ;;  %p400_p10 = pnand %p399_p9, %p393_p6 }
  0x49   :  { %209 = vmatprep.subr.mxu1 %v85_v30 }
  0x4a   :  { %210 = vmatpush1.msra.mxu1 %v84_v31 }
  0x4b   :  { %211 = vmatprep.subr.mxu1 %v83_v32 }
  0x4c   :  { %212 = vmatpush1.msra.mxu1 %v82_v33 }
  0x4d   :  { %213 = vmatprep.subr.mxu1 %v81_v34 }
  0x4e   :  { %214 = vmatpush1.msra.mxu1 %v80_v35 }
  0x4f   :  { %215 = vmatprep.subr.mxu1 %v79_v36 }
  0x50   :  { %216 = vmatpush1.msra.mxu1 %v78_v37 }
  0x51   :  { %217 = vmatprep.subr.mxu1 %v77_v38 }
  0x52   :  { %218 = vmatpush1.msra.mxu1 %v76_v39 }
  0x53   :  { %219 = vmatprep.subr.mxu1 %v75_v40 }
  0x54   :  { %220 = vmatpush1.msra.mxu1 %v74_v41 }
  0x55   :  { %254 = vmatmul.mubr.f32.vlgmr.msra.gmra.mxu1 %v72_v42 }
 0x100   :  { %v184_v48 = vpop.f32.mrf.mxu0 }
 0x102   :  { %v186_v53 = vpop.f32.mrf.mxu0 }
 0x115   :  { %v255_v50 = vpop.f32.mrf.mxu1 }
 0x116   :  { %v256_v51 = vadd.f32 %v255_v50, %v184_v48 }
 0x117   :  { %v257_v54 = vpop.f32.mrf.mxu1 }
 0x118   :  { %v272_v55 = vadd.f32 %v265_v49, %v256_v51  ;;  %v258_v56 = vadd.f32 %v257_v54, %v186_v53 }
 0x11a   :  { %308 = vtanh.f32 %v272_v55  ;;  %v273_v57 = vadd.f32 %v269_v52, %v258_v56 }
 0x11c   :  { %310 = vtanh.f32 %v273_v57 }
 0x127   :  { %v309_v58 = vpop.eup %308 }
 0x128   :  { %v276_v59 = vmul.f32 0.5, %v309_v58 }
 0x129   :  { %v311_v60 = vpop.eup %310 }
 0x12a   :  { %v277_v61 = vadd.f32 0.5, %v276_v59  ;;  %v278_v62 = vsub.f32 %v311_v60, %v72_v42 }
 0x12c   :  { %v279_v63 = vmul.f32 %v278_v62, %v277_v61 }
 0x12e   :  { %v280_v0 = vadd.f32 %v279_v63, %v72_v42 }
 0x130   :  { %281 = vst [vmem:[#allocation10] sm:$0xff] %v280_v0 }
 0x131   :  { %403 = shalt.err (!%p400_p10)
}
 0x132   :  { %291 = dma.vmem_to_hbm [thread:$0]  %s289_s4, 128, %s481_s5, [#allocation4]  }
 0x133   :  { %418 = dma.done.wait [#allocation4], 128  }
 0x134   :  { %419 = vsyncadd [#allocation4], 4294967168 }
 0x135   :  { %295 = vsyncpa [#allocation3], 1 }
 0x136   :  { %296 = vsyncpa [#allocation6], 1 }
 0x137   :  { %297 = vsyncpa [#allocation9], 1 }
 0x138   :  { %298 = vsyncpa [#allocation4], 1 }

</bundles_post_ra>
